<compile_context>
chip_gen: v7x
topology: tpu7x:2x2x1
jax: 0.10.0
libtpu: 0.0.40
codegen_flags: <defaults>
</compile_context>

<pallas_src>
import math
import jax
import jax.numpy as jnp
from jax.experimental import pallas as pl
from jax.experimental.pallas import tpu as pltpu

LANE = 128


def gcn_adj_kernel(x_ref, a_ref, w1_ref, w2_ref, out_ref):
    # Layer 1:  h1 = relu(A_norm @ (X @ W1))
    z1 = jnp.dot(x_ref[...], w1_ref[...], preferred_element_type=jnp.float32)
    h1 = jnp.dot(a_ref[...], z1.astype(jnp.bfloat16),          # bf16 MXU, f32 acc
                 preferred_element_type=jnp.float32)
    h1 = jnp.maximum(h1, 0.0)                                   # activation (ReLU)
    # Layer 2:  out = A_norm @ (h1 @ W2_padded)   (lane-dense (N, 128) store)
    z2 = jnp.dot(h1, w2_ref[...], preferred_element_type=jnp.float32)
    out_ref[...] = jnp.dot(a_ref[...], z2.astype(jnp.bfloat16),
                           preferred_element_type=jnp.float32)


def gcn_adj_forward(x, adj, norm, w1, w2):
    N, F = x.shape
    H = w1.shape[1]
    C = w2.shape[1]
    Cp = ((C + LANE - 1) // LANE) * LANE  # lane-dense output width (>= 128)

    # --- graph-static preprocessing (amortized setup, outside the kernel) ------
    # Fold symmetric normalization into the adjacency: norm*(A@(norm*v)) == A_norm@v.
    # adj values are {0,1}; the folded values norm_i*norm_j round to bf16 (~3 digits),
    # which is acceptable for GCN (f32 accumulation is kept in-kernel).
    a_norm = (norm * adj * norm.T).astype(jnp.bfloat16)
    # Zero-pad W2 columns so the final store is an unmasked, lane-dense (N, Cp) slab.
    w2p = jnp.zeros((H, Cp), jnp.float32).at[:, :C].set(w2)

    flops = 2 * N * (F * H + N * H + H * Cp + N * Cp)
    bytes_accessed = (x.size * 4 + a_norm.size * 2 + w1.size * 4
                      + w2p.size * 4 + N * Cp * 4)

    full = lambda shape: pl.BlockSpec(shape, lambda i: (0, 0))
    out_padded = pl.pallas_call(
        gcn_adj_kernel,
        out_shape=jax.ShapeDtypeStruct((N, Cp), jnp.float32),
        grid=(1,),
        in_specs=[
            full((N, F)),        # x               (f32)
            full((N, N)),        # A_norm          (bf16)
            full((F, H)),        # weight1         (f32)
            full((H, Cp)),       # weight2, padded (f32)
        ],
        out_specs=full((N, Cp)),
        compiler_params=pltpu.CompilerParams(
            dimension_semantics=("arbitrary",),
        ),
        cost_estimate=pl.CostEstimate(
            flops=flops, transcendentals=0, bytes_accessed=bytes_accessed),
    )(x, a_norm, w1, w2p)
    return out_padded[:, :C]


def reference_forward(x, adj, norm, w1, w2):
    # Faithful f32 re-implementation of the PyTorch module (dropout == identity).
    h = x @ w1
    h = h * norm
    h = adj @ h
    h = h * norm
    h = jnp.maximum(h, 0.0)
    h = h @ w2
    h = h * norm
    h = adj @ h
    h = h * norm
    return h


if __name__ == "__main__":
    # Small, MXU/vreg-friendly shapes.
    N_nodes   = 128   # number of graph nodes
    in_feats  = 32
    n_hidden  = 32
    n_classes = 16

    key = jax.random.PRNGKey(0)
    k_x, k_adj, k_w1, k_w2 = jax.random.split(key, 4)

    # Node features.
    x = jax.random.normal(k_x, (N_nodes, in_feats), dtype=jnp.float32)

    # Deterministic sparse-ish binary adjacency (dense representation) + self loops.
    adj = (jax.random.uniform(k_adj, (N_nodes, N_nodes)) < 0.05).astype(jnp.float32)
    adj = jnp.maximum(adj, jnp.eye(N_nodes, dtype=jnp.float32))

    # Symmetric-normalization vector: deg^(-1/2), shape (N, 1).
    deg = jnp.sum(adj, axis=1, keepdims=True)
    norm = jax.lax.rsqrt(jnp.maximum(deg, 1.0)).astype(jnp.float32)

    # Parameter init matching reset_parameters(): U(-stdv, stdv), stdv = 1/sqrt(fan_out).
    stdv1 = 1.0 / math.sqrt(n_hidden)
    stdv2 = 1.0 / math.sqrt(n_classes)
    w1 = jax.random.uniform(k_w1, (in_feats, n_hidden),
                            minval=-stdv1, maxval=stdv1, dtype=jnp.float32)
    w2 = jax.random.uniform(k_w2, (n_hidden, n_classes),
                            minval=-stdv2, maxval=stdv2, dtype=jnp.float32)

    out = gcn_adj_forward(x, adj, norm, w1, w2)
    out = jax.block_until_ready(out)

    ref = reference_forward(x, adj, norm, w1, w2)
    assert out.shape == (N_nodes, n_classes)
    # Tolerance loosened vs. the pure-f32 version: the adjacency matmuls now run on
    # the bf16 MXU path (f32 accumulation); observed error is ~1e-3, bound at 2e-2.
    assert jnp.allclose(out, ref, atol=2e-2, rtol=2e-2), "Pallas kernel mismatch vs reference"

    print("KERNEL_OK")
</pallas_src>

<mosaic_0001>
module attributes {stable_mosaic.version = 11 : i64} {
  func.func @gcn_adj_kernel(%arg0: i32, %arg1: memref<128x32xf32, #tpu.memory_space<vmem>>, %arg2: memref<128x128xbf16, #tpu.memory_space<vmem>>, %arg3: memref<32x32xf32, #tpu.memory_space<vmem>>, %arg4: memref<32x128xf32, #tpu.memory_space<vmem>>, %arg5: memref<128x128xf32, #tpu.memory_space<vmem>>) attributes {dimension_semantics = [#tpu.dimension_semantics<arbitrary>], iteration_bounds = array<i64: 1>, scalar_prefetch = 0 : i64, scratch_operands = 0 : i64, tpu.core_type = #tpu.core_type<tc>, window_params = [{pipeline_mode = #tpu.pipeline_mode<synchronous>, transform_indices = @transform_0, window_bounds = array<i64: 128, 32>}, {pipeline_mode = #tpu.pipeline_mode<synchronous>, transform_indices = @transform_1, window_bounds = array<i64: 128, 128>}, {pipeline_mode = #tpu.pipeline_mode<synchronous>, transform_indices = @transform_2, window_bounds = array<i64: 32, 32>}, {pipeline_mode = #tpu.pipeline_mode<synchronous>, transform_indices = @transform_3, window_bounds = array<i64: 32, 128>}, {pipeline_mode = #tpu.pipeline_mode<synchronous>, transform_indices = @transform_4, window_bounds = array<i64: 128, 128>}]} {
    %c0 = arith.constant 0 : index
    %c0_0 = arith.constant 0 : index
    %0 = vector.load %arg1[%c0, %c0_0] : memref<128x32xf32, #tpu.memory_space<vmem>>, vector<128x32xf32>
    %c0_1 = arith.constant 0 : index
    %c0_2 = arith.constant 0 : index
    %1 = vector.load %arg3[%c0_1, %c0_2] : memref<32x32xf32, #tpu.memory_space<vmem>>, vector<32x32xf32>
    %cst = arith.constant dense<0.000000e+00> : vector<128x32xf32>
    %2 = tpu.matmul %0, %1, %cst {dimension_numbers = #tpu.dot_dimension_numbers<[1], [0], [0], [1], [0, 0, 1, 1], [], []>} : vector<128x32xf32>, vector<32x32xf32>, vector<128x32xf32> -> vector<128x32xf32>
    %c0_3 = arith.constant 0 : index
    %c0_4 = arith.constant 0 : index
    %3 = vector.load %arg2[%c0_3, %c0_4] : memref<128x128xbf16, #tpu.memory_space<vmem>>, vector<128x128xbf16>
    %4 = arith.truncf %2 : vector<128x32xf32> to vector<128x32xbf16>
    %cst_5 = arith.constant dense<0.000000e+00> : vector<128x32xf32>
    %5 = tpu.matmul %3, %4, %cst_5 {dimension_numbers = #tpu.dot_dimension_numbers<[1], [0], [0], [1], [0, 0, 1, 1], [], []>} : vector<128x128xbf16>, vector<128x32xbf16>, vector<128x32xf32> -> vector<128x32xf32>
    %cst_6 = arith.constant 0.000000e+00 : f32
    %6 = vector.broadcast %cst_6 : f32 to vector<128x32xf32>
    %7 = arith.maximumf %5, %6 : vector<128x32xf32>
    %c0_7 = arith.constant 0 : index
    %c0_8 = arith.constant 0 : index
    %8 = vector.load %arg4[%c0_7, %c0_8] : memref<32x128xf32, #tpu.memory_space<vmem>>, vector<32x128xf32>
    %cst_9 = arith.constant dense<0.000000e+00> : vector<128x128xf32>
    %9 = tpu.matmul %7, %8, %cst_9 {dimension_numbers = #tpu.dot_dimension_numbers<[1], [0], [0], [1], [0, 0, 1, 1], [], []>} : vector<128x32xf32>, vector<32x128xf32>, vector<128x128xf32> -> vector<128x128xf32>
    %c0_10 = arith.constant 0 : index
    %c0_11 = arith.constant 0 : index
    %10 = vector.load %arg2[%c0_10, %c0_11] : memref<128x128xbf16, #tpu.memory_space<vmem>>, vector<128x128xbf16>
    %11 = arith.truncf %9 : vector<128x128xf32> to vector<128x128xbf16>
    %cst_12 = arith.constant dense<0.000000e+00> : vector<128x128xf32>
    %12 = tpu.matmul %10, %11, %cst_12 {dimension_numbers = #tpu.dot_dimension_numbers<[1], [0], [0], [1], [0, 0, 1, 1], [], []>} : vector<128x128xbf16>, vector<128x128xbf16>, vector<128x128xf32> -> vector<128x128xf32>
    %c0_13 = arith.constant 0 : index
    %c0_14 = arith.constant 0 : index
    %13 = vector.load %arg5[%c0_13, %c0_14] : memref<128x128xf32, #tpu.memory_space<vmem>>, vector<128x128xf32>
    tpu.vector_store %arg5[%c0_13, %c0_14], %12 {strides = array<i32>} : memref<128x128xf32, #tpu.memory_space<vmem>>, vector<128x128xf32>,
    return
  }
  func.func @transform_0(%arg0: i32) -> (i32, i32) {
    %c0_i32 = arith.constant 0 : i32
    %c0_i32_0 = arith.constant 0 : i32
    %c0_i32_1 = arith.constant 0 : i32
    return %c0_i32, %c0_i32_0 : i32, i32
  }
  func.func @transform_1(%arg0: i32) -> (i32, i32) {
    %c0_i32 = arith.constant 0 : i32
    %c0_i32_0 = arith.constant 0 : i32
    %c0_i32_1 = arith.constant 0 : i32
    return %c0_i32, %c0_i32_0 : i32, i32
  }
  func.func @transform_2(%arg0: i32) -> (i32, i32) {
    %c0_i32 = arith.constant 0 : i32
    %c0_i32_0 = arith.constant 0 : i32
    %c0_i32_1 = arith.constant 0 : i32
    return %c0_i32, %c0_i32_0 : i32, i32
  }
  func.func @transform_3(%arg0: i32) -> (i32, i32) {
    %c0_i32 = arith.constant 0 : i32
    %c0_i32_0 = arith.constant 0 : i32
    %c0_i32_1 = arith.constant 0 : i32
    return %c0_i32, %c0_i32_0 : i32, i32
  }
  func.func @transform_4(%arg0: i32) -> (i32, i32) {
    %c0_i32 = arith.constant 0 : i32
    %c0_i32_0 = arith.constant 0 : i32
    %c0_i32_1 = arith.constant 0 : i32
    return %c0_i32, %c0_i32_0 : i32, i32
  }
}

</mosaic_0001>

<bundles_post_ra>
// kernel: tpu_custom_call.1
= control target key start
LH: loop header
LB: loop body
LE: loop exit
PB: predicated region body
PF: predicated region fallthrough
CT: control target
= control target key end

     0   :  { %vm39_vm0 = vcmask 261120   ;;  %s1255_s0 = inlined_call_operand.vmem [shape: f32[128,32], index: 0, kind: input, shape index: {}]   ;;  %s1256_s1 = inlined_call_operand.vmem [shape: bf16[128,128], index: 1, kind: input, shape index: {}]   ;;  %s1257_s2 = inlined_call_operand.vmem [shape: f32[32,32], index: 2, kind: input, shape index: {}]   ;;  %s1258_s3 = inlined_call_operand.vmem [shape: f32[32,128], index: 3, kind: input, shape index: {}]   ;;  %s1259_s4 = inlined_call_operand.hbm [shape: f32[128,128], index: 4, kind: output, shape index: {}]  }
   0x1   :  { %v35_v0 = vld [vmem:[%s1257_s2] sm:$0xff]  ;;  %v36_v1 = vld [vmem:[%s1257_s2 + $0x8] sm:$0xff]  ;;  %v37_v2 = vld [vmem:[%s1257_s2 + $0x10] sm:$0xff] }
   0x2   :  { %v992_v3 = vpack.c.bf16 %v36_v1, %v35_v0  ;;  %v38_v4 = vld [vmem:[%s1257_s2 + $0x18] sm:$0xff]  ;;  %v19_v5 = vld [vmem:[%s1255_s0] sm:$0xff]  ;;  %v20_v7 = vld [vmem:[%s1255_s0 + $0x8] sm:$0xff] }
   0x3   :  { %v996_v6 = vpack.c.bf16 %v38_v4, %v37_v2  ;;  %872 = vmatprep.mubr.msk.f32.mxu0 %vm39_vm0, %v19_v5  ;;  %v21_v8 = vld [vmem:[%s1255_s0 + $0x10] sm:$0xff]  ;;  %v22_v9 = vld [vmem:[%s1255_s0 + $0x18] sm:$0xff] }
   0x4   :  { %993 = vmatprep.subr.bf16.mxu0 %v992_v3 }
   0x5   :  { %995 = vmatpush3.bf16.msra.mxu0 %v992_v3 }
   0x6   :  { %997 = vmatprep.subr.bf16.mxu0 %v996_v6 }
   0x9   :  { %999 = vmatpush3.bf16.msra.mxu0 %v996_v6 }
   0xc   :  { %873 = vmatmul.mubr.msk.f32.vlgmr.msra.gmra.mrb[0].mxu0 %vm39_vm0, %v20_v7 }
   0xd   :  { %875 = vmatprep.mubr.msk.f32.mxu0 %vm39_vm0, %v21_v8 }
   0xe   :  { %9 = vsyncpa [#allocation3], 0  ;;  %v23_v10 = vld [vmem:[%s1255_s0 + $0x20] sm:$0xff]  ;;  %v24_v11 = vld [vmem:[%s1255_s0 + $0x28] sm:$0xff] }
   0xf   :  { %v25_v12 = vld [vmem:[%s1255_s0 + $0x30] sm:$0xff]  ;;  %v26_v13 = vld [vmem:[%s1255_s0 + $0x38] sm:$0xff]  ;;  %v27_v14 = vld [vmem:[%s1255_s0 + $0x40] sm:$0xff] }
  0x10   :  { %876 = vmatmul.mubr.msk.f32.gmra.mrb[2].mxu0 %vm39_vm0, %v22_v9  ;;  %v28_v15 = vld [vmem:[%s1255_s0 + $0x48] sm:$0xff]  ;;  %v29_v16 = vld [vmem:[%s1255_s0 + $0x50] sm:$0xff]  ;;  %v30_v17 = vld [vmem:[%s1255_s0 + $0x58] sm:$0xff] }
  0x11   :  { %878 = vmatprep.mubr.msk.f32.mxu0 %vm39_vm0, %v23_v10  ;;  %v31_v18 = vld [vmem:[%s1255_s0 + $0x60] sm:$0xff]  ;;  %v32_v19 = vld [vmem:[%s1255_s0 + $0x68] sm:$0xff]  ;;  %v33_v20 = vld [vmem:[%s1255_s0 + $0x70] sm:$0xff] }
  0x12   :  { %v34_v21 = vld [vmem:[%s1255_s0 + $0x78] sm:$0xff]  ;;  %v1166_v22 = vld [vmem:[%s1256_s1] sm:$0xff]   ;;  %v419_v24 = vld [vmem:[%s1258_s3 + $0x8] sm:$0xff] }
  0x13   :  { %912 = vmatprep.mubr.bf16.mxu1 %v1166_v22  ;;  %v418_v23 = vld [vmem:[%s1258_s3] sm:$0xff]  ;;  %v420_v25 = vld [vmem:[%s1258_s3 + $0x10] sm:$0xff]  ;;  %v421_v27 = vld [vmem:[%s1258_s3 + $0x18] sm:$0xff] }
  0x14   :  { %879 = vmatmul.mubr.msk.f32.gmra.mrb[4].mxu0 %vm39_vm0, %v24_v11  ;;  %v1000_v26 = vpack.c.bf16 %v419_v24, %v418_v23  ;;  %v1004_v28 = vpack.c.bf16 %v421_v27, %v420_v25  ;;  %v1184_v53 = vld [vmem:[%s1256_s1 + $0x8] sm:$0xff]   ;;  %v1029_v54 = vld [vmem:[%s1256_s1 + $0x10] sm:$0xff]   ;;  %v1193_v55 = vld [vmem:[%s1256_s1 + $0x18] sm:$0xff]  }
  0x15   :  { %881 = vmatprep.mubr.msk.f32.mxu0 %vm39_vm0, %v25_v12  ;;  %v1198_v56 = vld [vmem:[%s1256_s1 + $0x20] sm:$0xff]   ;;  %v1205_v57 = vld [vmem:[%s1256_s1 + $0x28] sm:$0xff]   ;;  %v1210_v58 = vld [vmem:[%s1256_s1 + $0x30] sm:$0xff]  }
  0x16   :  { %1001 = vmatprep.subr.bf16.mxu0 %v1000_v26  ;;  %v1217_v59 = vld [vmem:[%s1256_s1 + $0x38] sm:$0xff]   ;;  %s1059_s1 = smov [#allocation2]  }
  0x17   :  { %1003 = vmatpush3.bf16.msra.mxu0 %v1000_v26  ;;  %s741_s23 = sshll.u32 %s1059_s1, 4  ;;  %s742_s23 = int_to_ptr.vmem [resolvable:$true] %s741_s23 }
  0x18   :  { %882 = vmatmul.mubr.msk.f32.gmra.mrb[6].mxu0 %vm39_vm0, %v26_v13  ;;  %1005 = vmatprep.subr.bf16.mxu0 %v1004_v28  ;;  %s1035_s24 = scalar_lea.vmem %s742_s23, 2048  ;;  %p1040_p1 = scmp.lt.s32.totalorder %s742_s23, %s742_s23 }
  0x19   :  { %884 = vmatprep.mubr.msk.f32.mxu0 %vm39_vm0, %v27_v14  ;;  %p1036_p0 = scmp.ne.s32.totalorder %s742_s23, %s1035_s24  ;;  %p1041_p2 = scmp.lt.s32.totalorder %s1035_s24, %s1035_s24 }
  0x1b   :  { %1007 = vmatpush3.bf16.msra.mxu0 %v1004_v28  ;;  %p1042_p3 = por %p1041_p2, %p1040_p1 }
  0x1c   :  { %885 = vmatmul.mubr.msk.f32.gmra.mrb[8].mxu0 %vm39_vm0, %v28_v15 }
  0x1d   :  { %887 = vmatprep.mubr.msk.f32.mxu0 %vm39_vm0, %v29_v16  ;;  %p1043_p4 = pnand %p1042_p3, %p1036_p0 }
  0x20   :  { %888 = vmatmul.mubr.msk.f32.gmra.mrb[10].mxu0 %vm39_vm0, %v30_v17 }
  0x21   :  { %890 = vmatprep.mubr.msk.f32.mxu0 %vm39_vm0, %v31_v18 }
  0x24   :  { %891 = vmatmul.mubr.msk.f32.gmra.mrb[12].mxu0 %vm39_vm0, %v32_v19 }
  0x25   :  { %893 = vmatprep.mubr.msk.f32.mxu0 %vm39_vm0, %v33_v20 }
  0x28   :  { %894 = vmatmul.mubr.msk.f32.gmra.mrb[14].mxu0 %vm39_vm0, %v34_v21 }
  0xdf   :  { %v874_v29 = vpop.f32.mrb[0].mxu0 }
  0xe0   :  { %v154_v30 = vpop.f32.mrb[1].mxu0 }
  0xe1   :  { %v249_v31 = vpack.c.bf16 %v874_v29, %v154_v30 }
  0xe3   :  { %v877_v32 = vpop.f32.mrb[2].mxu0  ;;  %896 = vmatprep.subr.bf16.mxu1 %v249_v31 }
  0xe4   :  { %v164_v33 = vpop.f32.mrb[3].mxu0  ;;  %897 = vmatpush3.bf16.msra.mxu1 %v249_v31 }
  0xe5   :  { %v250_v34 = vpack.c.bf16 %v877_v32, %v164_v33 }
  0xe7   :  { %v880_v35 = vpop.f32.mrb[4].mxu0  ;;  %898 = vmatprep.subr.bf16.mxu1 %v250_v34 }
  0xe8   :  { %v174_v36 = vpop.f32.mrb[5].mxu0  ;;  %899 = vmatpush3.bf16.msra.mxu1 %v250_v34 }
  0xe9   :  { %v251_v37 = vpack.c.bf16 %v880_v35, %v174_v36 }
  0xeb   :  { %v883_v38 = vpop.f32.mrb[6].mxu0  ;;  %900 = vmatprep.subr.bf16.mxu1 %v251_v37 }
  0xec   :  { %v184_v39 = vpop.f32.mrb[7].mxu0  ;;  %901 = vmatpush3.bf16.msra.mxu1 %v251_v37 }
  0xed   :  { %v252_v40 = vpack.c.bf16 %v883_v38, %v184_v39 }
  0xef   :  { %v886_v41 = vpop.f32.mrb[8].mxu0  ;;  %902 = vmatprep.subr.bf16.mxu1 %v252_v40 }
  0xf0   :  { %v194_v42 = vpop.f32.mrb[9].mxu0  ;;  %903 = vmatpush3.bf16.msra.mxu1 %v252_v40 }
  0xf1   :  { %v253_v43 = vpack.c.bf16 %v886_v41, %v194_v42 }
  0xf3   :  { %v889_v44 = vpop.f32.mrb[10].mxu0  ;;  %904 = vmatprep.subr.bf16.mxu1 %v253_v43 }
  0xf4   :  { %v204_v45 = vpop.f32.mrb[11].mxu0  ;;  %905 = vmatpush3.bf16.msra.mxu1 %v253_v43 }
  0xf5   :  { %v254_v46 = vpack.c.bf16 %v889_v44, %v204_v45 }
  0xf7   :  { %v892_v47 = vpop.f32.mrb[12].mxu0  ;;  %906 = vmatprep.subr.bf16.mxu1 %v254_v46 }
  0xf8   :  { %v214_v48 = vpop.f32.mrb[13].mxu0  ;;  %907 = vmatpush3.bf16.msra.mxu1 %v254_v46 }
  0xf9   :  { %v255_v49 = vpack.c.bf16 %v892_v47, %v214_v48 }
  0xfb   :  { %v895_v50 = vpop.f32.mrb[14].mxu0  ;;  %908 = vmatprep.subr.bf16.mxu1 %v255_v49 }
  0xfc   :  { %v224_v51 = vpop.f32.mrb[15].mxu0  ;;  %909 = vmatpush3.bf16.msra.mxu1 %v255_v49 }
  0xfd   :  { %v256_v52 = vpack.c.bf16 %v895_v50, %v224_v51 }
  0xff   :  { %910 = vmatprep.subr.bf16.mxu1 %v256_v52 }
 0x100   :  { %911 = vmatpush3.bf16.msra.mxu1 %v256_v52 }
 0x103   :  { %913 = vmatmul.mubr.bf16.vlgmr.msra.gmra.mrb[0].mxu1 %v1184_v53 }
 0x104   :  { %916 = vmatprep.mubr.bf16.mxu1 %v1029_v54 }
 0x10b   :  { %917 = vmatmul.mubr.bf16.gmra.mrb[4].mxu1 %v1193_v55 }
 0x10c   :  { %920 = vmatprep.mubr.bf16.mxu1 %v1198_v56 }
 0x113   :  { %921 = vmatmul.mubr.bf16.gmra.mrb[8].mxu1 %v1205_v57 }
 0x114   :  { %924 = vmatprep.mubr.bf16.mxu1 %v1210_v58 }
 0x11b   :  { %925 = vmatmul.mubr.bf16.gmra.mrb[12].mxu1 %v1217_v59 }
 0x11c   :  { %980 = vmatprep.mubr.bf16.mxu1 %v1029_v54 }
 0x1d6   :  { %v914_v60 = vpop.f32.mrb[0].mxu1 }
 0x1d7   :  { %v339_v61 = vpop.f32.mrb[1].mxu1  ;;  %v404_v2 = vmax.f32 %v914_v60, 0.0 }
 0x1d8   :  { %v402_v62 = vmax.f32 %v339_v61, 0.0  ;;  %v915_v63 = vpop.f32.mrb[2].mxu1 }
 0x1d9   :  { %v342_v0 = vpop.f32.mrb[3].mxu1  ;;  %v405_v3 = vmax.f32 %v915_v63, 0.0 }
 0x1da   :  { %v403_v1 = vmax.f32 %v342_v0, 0.0  ;;  %936 = vmatprep.mubr.msk.f32.mxu0 %vm39_vm0, %v402_v62 }
 0x1dc   :  { %937 = vmatmul.mubr.msk.f32.vlgmr.msra.gmra.mrb[16].mxu0 %vm39_vm0, %v403_v1 }
 0x1dd   :  { %939 = vmatprep.mubr.msk.f32.mxu0 %vm39_vm0, %v404_v2 }
 0x1de   :  { %v918_v4 = vpop.f32.mrb[4].mxu1 }
 0x1df   :  { %v355_v5 = vpop.f32.mrb[5].mxu1  ;;  %v408_v10 = vmax.f32 %v918_v4, 0.0 }
 0x1e0   :  { %v406_v6 = vmax.f32 %v355_v5, 0.0  ;;  %v919_v7 = vpop.f32.mrb[6].mxu1  ;;  %940 = vmatmul.mubr.msk.f32.gmra.mrb[18].mxu0 %vm39_vm0, %v405_v3 }
 0x1e1   :  { %v358_v8 = vpop.f32.mrb[7].mxu1  ;;  %v409_v11 = vmax.f32 %v919_v7, 0.0 }
 0x1e2   :  { %v407_v9 = vmax.f32 %v358_v8, 0.0  ;;  %942 = vmatprep.mubr.msk.f32.mxu0 %vm39_vm0, %v406_v6 }
 0x1e4   :  { %943 = vmatmul.mubr.msk.f32.gmra.mrb[20].mxu0 %vm39_vm0, %v407_v9 }
 0x1e5   :  { %945 = vmatprep.mubr.msk.f32.mxu0 %vm39_vm0, %v408_v10 }
 0x1e6   :  { %v922_v12 = vpop.f32.mrb[8].mxu1 }
 0x1e7   :  { %v371_v13 = vpop.f32.mrb[9].mxu1  ;;  %v412_v18 = vmax.f32 %v922_v12, 0.0 }
 0x1e8   :  { %v410_v14 = vmax.f32 %v371_v13, 0.0  ;;  %v923_v15 = vpop.f32.mrb[10].mxu1  ;;  %946 = vmatmul.mubr.msk.f32.gmra.mrb[22].mxu0 %vm39_vm0, %v409_v11 }
 0x1e9   :  { %v374_v16 = vpop.f32.mrb[11].mxu1  ;;  %v413_v19 = vmax.f32 %v923_v15, 0.0 }
 0x1ea   :  { %v411_v17 = vmax.f32 %v374_v16, 0.0  ;;  %948 = vmatprep.mubr.msk.f32.mxu0 %vm39_vm0, %v410_v14 }
 0x1ec   :  { %949 = vmatmul.mubr.msk.f32.gmra.mrb[24].mxu0 %vm39_vm0, %v411_v17 }
 0x1ed   :  { %951 = vmatprep.mubr.msk.f32.mxu0 %vm39_vm0, %v412_v18 }
 0x1ee   :  { %v926_v20 = vpop.f32.mrb[12].mxu1 }
 0x1ef   :  { %v387_v21 = vpop.f32.mrb[13].mxu1  ;;  %v416_v27 = vmax.f32 %v926_v20, 0.0 }
 0x1f0   :  { %v414_v23 = vmax.f32 %v387_v21, 0.0  ;;  %v927_v24 = vpop.f32.mrb[14].mxu1  ;;  %952 = vmatmul.mubr.msk.f32.gmra.mrb[26].mxu0 %vm39_vm0, %v413_v19 }
 0x1f1   :  { %v390_v25 = vpop.f32.mrb[15].mxu1  ;;  %v417_v28 = vmax.f32 %v927_v24, 0.0 }
 0x1f2   :  { %v415_v26 = vmax.f32 %v390_v25, 0.0  ;;  %954 = vmatprep.mubr.msk.f32.mxu0 %vm39_vm0, %v414_v23 }
 0x1f4   :  { %955 = vmatmul.mubr.msk.f32.gmra.mrb[28].mxu0 %vm39_vm0, %v415_v26 }
 0x1f5   :  { %957 = vmatprep.mubr.msk.f32.mxu0 %vm39_vm0, %v416_v27 }
 0x1f8   :  { %958 = vmatmul.mubr.msk.f32.gmra.mrb[30].mxu0 %vm39_vm0, %v417_v28 }
 0x1f9   :  { %976 = vmatprep.mubr.bf16.mxu0 %v1166_v22 }
 0x2af   :  { %v938_v29 = vpop.f32.mrb[16].mxu0 }
 0x2b0   :  { %v536_v30 = vpop.f32.mrb[17].mxu0 }
 0x2b1   :  { %v615_v31 = vpack.c.bf16 %v938_v29, %v536_v30 }
 0x2b3   :  { %v941_v32 = vpop.f32.mrb[18].mxu0  ;;  %960 = vmatprep.subr.bf16.mxu0 %v615_v31  ;;  %1008 = vmatprep.subr.bf16.mxu1 %v615_v31 }
 0x2b4   :  { %v546_v33 = vpop.f32.mrb[19].mxu0  ;;  %961 = vmatpush3.bf16.msra.mxu0 %v615_v31  ;;  %1016 = vmatpush3.bf16.msra.mxu1 %v615_v31 }
 0x2b5   :  { %v616_v34 = vpack.c.bf16 %v941_v32, %v546_v33 }
 0x2b7   :  { %v944_v35 = vpop.f32.mrb[20].mxu0  ;;  %962 = vmatprep.subr.bf16.mxu0 %v616_v34  ;;  %1009 = vmatprep.subr.bf16.mxu1 %v616_v34 }
 0x2b8   :  { %v556_v36 = vpop.f32.mrb[21].mxu0  ;;  %963 = vmatpush3.bf16.msra.mxu0 %v616_v34  ;;  %1017 = vmatpush3.bf16.msra.mxu1 %v616_v34 }
 0x2b9   :  { %v617_v37 = vpack.c.bf16 %v944_v35, %v556_v36 }
 0x2bb   :  { %v947_v38 = vpop.f32.mrb[22].mxu0  ;;  %964 = vmatprep.subr.bf16.mxu0 %v617_v37  ;;  %1010 = vmatprep.subr.bf16.mxu1 %v617_v37 }
 0x2bc   :  { %v566_v22 = vpop.f32.mrb[23].mxu0  ;;  %965 = vmatpush3.bf16.msra.mxu0 %v617_v37  ;;  %1018 = vmatpush3.bf16.msra.mxu1 %v617_v37 }
 0x2bd   :  { %v618_v39 = vpack.c.bf16 %v947_v38, %v566_v22 }
 0x2bf   :  { %v950_v40 = vpop.f32.mrb[24].mxu0  ;;  %966 = vmatprep.subr.bf16.mxu0 %v618_v39  ;;  %1011 = vmatprep.subr.bf16.mxu1 %v618_v39 }
 0x2c0   :  { %v576_v41 = vpop.f32.mrb[25].mxu0  ;;  %967 = vmatpush3.bf16.msra.mxu0 %v618_v39  ;;  %1019 = vmatpush3.bf16.msra.mxu1 %v618_v39 }
 0x2c1   :  { %v619_v42 = vpack.c.bf16 %v950_v40, %v576_v41 }
 0x2c3   :  { %v953_v43 = vpop.f32.mrb[26].mxu0  ;;  %968 = vmatprep.subr.bf16.mxu0 %v619_v42  ;;  %1012 = vmatprep.subr.bf16.mxu1 %v619_v42 }
 0x2c4   :  { %v586_v44 = vpop.f32.mrb[27].mxu0  ;;  %969 = vmatpush3.bf16.msra.mxu0 %v619_v42  ;;  %1020 = vmatpush3.bf16.msra.mxu1 %v619_v42 }
 0x2c5   :  { %v620_v45 = vpack.c.bf16 %v953_v43, %v586_v44 }
 0x2c7   :  { %v956_v46 = vpop.f32.mrb[28].mxu0  ;;  %970 = vmatprep.subr.bf16.mxu0 %v620_v45  ;;  %1013 = vmatprep.subr.bf16.mxu1 %v620_v45 }
 0x2c8   :  { %v596_v47 = vpop.f32.mrb[29].mxu0  ;;  %971 = vmatpush3.bf16.msra.mxu0 %v620_v45  ;;  %1021 = vmatpush3.bf16.msra.mxu1 %v620_v45 }
 0x2c9   :  { %v621_v48 = vpack.c.bf16 %v956_v46, %v596_v47 }
 0x2cb   :  { %v959_v49 = vpop.f32.mrb[30].mxu0  ;;  %972 = vmatprep.subr.bf16.mxu0 %v621_v48  ;;  %1014 = vmatprep.subr.bf16.mxu1 %v621_v48 }
 0x2cc   :  { %v606_v50 = vpop.f32.mrb[31].mxu0  ;;  %973 = vmatpush3.bf16.msra.mxu0 %v621_v48  ;;  %1022 = vmatpush3.bf16.msra.mxu1 %v621_v48 }
 0x2cd   :  { %v622_v51 = vpack.c.bf16 %v959_v49, %v606_v50 }
 0x2cf   :  { %974 = vmatprep.subr.bf16.mxu0 %v622_v51  ;;  %1015 = vmatprep.subr.bf16.mxu1 %v622_v51 }
 0x2d0   :  { %975 = vmatpush3.bf16.msra.mxu0 %v622_v51  ;;  %1023 = vmatpush3.bf16.msra.mxu1 %v622_v51 }
 0x2d3   :  { %981 = vmatmul.mubr.bf16.vlgmr.msra.gmra.mrb[16].mxu1 %v1193_v55  ;;  %977 = vmatmul.mubr.bf16.vlgmr.msra.gmra.mrb[32].mxu0 %v1184_v53 }
 0x2d4   :  { %984 = vmatprep.mubr.bf16.mxu1 %v1198_v56 }
 0x2db   :  { %985 = vmatmul.mubr.bf16.gmra.mrb[20].mxu1 %v1205_v57 }
 0x2dc   :  { %988 = vmatprep.mubr.bf16.mxu1 %v1210_v58 }
 0x2e3   :  { %989 = vmatmul.mubr.bf16.gmra.mrb[24].mxu1 %v1217_v59 }
 0x3a6   :  { %v982_v52 = vpop.f32.mrb[16].mxu1  ;;  %v978_v54 = vpop.f32.mrb[32].mxu0 }
 0x3a7   :  { %726 = vst [vmem:[#allocation2 + $0x30] sm:$0xff] %v982_v52  ;;  %v673_v60 = vpop.f32.mrb[17].mxu1  ;;  %722 = vst [vmem:[#allocation2 + $0x10] sm:$0xff] %v978_v54  ;;  %v657_v61 = vpop.f32.mrb[33].mxu0 }
 0x3a8   :  { %724 = vst [vmem:[#allocation2 + $0x20] sm:$0xff] %v673_v60  ;;  %v983_v62 = vpop.f32.mrb[18].mxu1  ;;  %720 = vst [vmem:[#allocation2] sm:$0xff] %v657_v61  ;;  %v979_v55 = vpop.f32.mrb[34].mxu0 }
 0x3a9   :  { %727 = vst [vmem:[#allocation2 + $0x38] sm:$0xff] %v983_v62  ;;  %v676_v53 = vpop.f32.mrb[19].mxu1  ;;  %723 = vst [vmem:[#allocation2 + $0x18] sm:$0xff] %v979_v55  ;;  %v660_v56 = vpop.f32.mrb[35].mxu0 }
 0x3aa   :  { %725 = vst [vmem:[#allocation2 + $0x28] sm:$0xff] %v676_v53  ;;  %721 = vst [vmem:[#allocation2 + $0x8] sm:$0xff] %v660_v56 }
 0x3ae   :  { %v986_v57 = vpop.f32.mrb[20].mxu1 }
 0x3af   :  { %730 = vst [vmem:[#allocation2 + $0x50] sm:$0xff] %v986_v57  ;;  %v689_v58 = vpop.f32.mrb[21].mxu1 }
 0x3b0   :  { %728 = vst [vmem:[#allocation2 + $0x40] sm:$0xff] %v689_v58  ;;  %v987_v59 = vpop.f32.mrb[22].mxu1 }
 0x3b1   :  { %731 = vst [vmem:[#allocation2 + $0x58] sm:$0xff] %v987_v59  ;;  %v692_v63 = vpop.f32.mrb[23].mxu1 }
 0x3b2   :  { %729 = vst [vmem:[#allocation2 + $0x48] sm:$0xff] %v692_v63 }
 0x3b6   :  { %v990_v0 = vpop.f32.mrb[24].mxu1 }
 0x3b7   :  { %734 = vst [vmem:[#allocation2 + $0x70] sm:$0xff] %v990_v0  ;;  %v705_v1 = vpop.f32.mrb[25].mxu1 }
 0x3b8   :  { %732 = vst [vmem:[#allocation2 + $0x60] sm:$0xff] %v705_v1  ;;  %v991_v2 = vpop.f32.mrb[26].mxu1 }
 0x3b9   :  { %735 = vst [vmem:[#allocation2 + $0x78] sm:$0xff] %v991_v2  ;;  %v708_v3 = vpop.f32.mrb[27].mxu1 }
 0x3ba   :  { %733 = vst [vmem:[#allocation2 + $0x68] sm:$0xff] %v708_v3 }
 0x3bb   :  { %1046 = shalt.err (!%p1043_p4)
}
 0x3bc   :  { %s1047_s27 = scalar_lea.hbm %s1259_s4, 2048 }
 0x3bd   :  { %p1048_p5 = scmp.ne.s32.totalorder %s1259_s4, %s1047_s27  ;;  %p1051_p6 = scmp.lt.u32.totalorder %s1047_s27, %s1259_s4 }
 0x3bf   :  { %p1053_p7 = pnand %p1051_p6, %p1048_p5 }
 0x3c1   :  { %1056 = shalt.err (!%p1053_p7)
}
 0x3c2   :  { %s1060_s5 = smov 128   ;;  %s1061_s6 = smov 8  }
 0x3c3   :  { %747 = dma.vmem_to_hbm [thread:$0]  %s742_s23, 2048, %s1259_s4, [#allocation3], %s1060_s5, %s1060_s5, %s1061_s6  }
 0x3c4   :  { %1057 = dma.done.wait [#allocation3], 2048  }
 0x3c5   :  { %1058 = vsyncadd [#allocation3], 4294965248 }
 0x3c6   :  { %751 = vsyncpa [#allocation3], 1 }

</bundles_post_ra>
